<compile_context>
chip_gen: v5e
topology: v5e:2x2
jax: 0.10.0
libtpu: 0.0.40
codegen_flags: <defaults>
</compile_context>

<pallas_src>
import functools

import jax
import jax.numpy as jnp
import numpy as np
from jax.experimental import pallas as pl
from jax.experimental.pallas import tpu as pltpu


def _round_up(n, m):
    return ((n + m - 1) // m) * m


# -----------------------------------------------------------------------------
# Fast path (d_head == 1): fused lane-dense kernel, gridded over the batch.
# -----------------------------------------------------------------------------
def _temporal_fused_kernel(x_ref, sw_ref, b_ref, fcw_ref, fcb_ref, out_ref, *,
                           emb_dim, periodic_dim):
    TE = sw_ref.shape[1]
    E = emb_dim

    x = x_ref[...]                                          # (TB, T) f32

    # Timestep->lane expansion + embedding affine on the MXU (K = T):
    #   S_w[t, lane] = w_flat[lane] if lane // E == t else 0
    # so (x @ S_w)[b, lane] = x[b, lane // E] * w_flat[lane].
    emb = jnp.dot(x, sw_ref[...],
                  preferred_element_type=jnp.float32,
                  precision=jax.lax.Precision.HIGHEST) + b_ref[...]

    # Periodic sin tail (last `periodic_dim` channels of each timestep's
    # E-block), then ReLU.  sin runs on all lanes and is masked; it is the
    # main remaining VALU cost now that the affine rides the MXU.
    chan = jax.lax.broadcasted_iota(jnp.int32, (1, TE), 1) % E
    feat = jnp.where(chan >= E - periodic_dim, jnp.sin(emb), emb)
    v = jnp.maximum(feat, 0.0)

    # d_head == 1: softmax over a single key is the identity, so the
    # multi-head attention output equals v and relu(relu(v)) == relu(v);
    # the general scores/exp/reciprocal block is dead compute here.

    # Linear(E, 1) fused with the mean over T: fcw_ref holds tile(fc_w, T)/T
    # as a (T*E, 1) column -> one MXU dot per tile.
    out_ref[...] = jnp.dot(v, fcw_ref[...],
                           preferred_element_type=jnp.float32,
                           precision=jax.lax.Precision.HIGHEST) + fcb_ref[0, 0]


def _temporal_fused_forward(x, s_w, b_flat, fcw_col, fcb, *,
                            emb_dim, periodic_dim, batch_tile):
    B, T = x.shape
    TE = s_w.shape[1]

    # Batch tile: multiple of 8 sublanes, capped so there are >= 2 grid steps
    # whenever possible (both v7x TensorCores / megacore split the "parallel"
    # batch axis).
    TB = max(8, min(int(batch_tile), _round_up(pl.cdiv(B, 2), 8)))
    TB = _round_up(TB, 8)
    n_blocks = pl.cdiv(B, TB)
    B_pad = n_blocks * TB

    # No wrapper-side pad of x: the final partial block reads don't-care rows
    # (row-local compute; their outputs land in the padded tail and are
    # sliced away).  Only the tiny-batch corner B < TB needs a pad so the
    # block window never exceeds the array itself.
    x_in = x
    if B < TB:
        x_in = jnp.pad(x, ((0, TB - B), (0, 0)))

    kernel = functools.partial(_temporal_fused_kernel,
                               emb_dim=emb_dim, periodic_dim=periodic_dim)
    out = pl.pallas_call(
        kernel,
        out_shape=jax.ShapeDtypeStruct((B_pad, 1), jnp.float32),
        grid=(n_blocks,),
        in_specs=[
            pl.BlockSpec((TB, T), lambda i: (i, 0)),        # x: batch-tiled
            pl.BlockSpec((T, TE), lambda i: (0, 0)),        # S_w (resident)
            pl.BlockSpec((1, TE), lambda i: (0, 0)),        # emb bias (resident)
            pl.BlockSpec((TE, 1), lambda i: (0, 0)),        # tile(fc_w,T)/T column
            pl.BlockSpec(memory_space=pltpu.MemorySpace.SMEM),  # fc bias scalar
        ],
        out_specs=pl.BlockSpec((TB, 1), lambda i: (i, 0)),
        compiler_params=pltpu.CompilerParams(
            dimension_semantics=("parallel",),
            vmem_limit_bytes=32 * 1024 * 1024),
    )(x_in, s_w, b_flat, fcw_col, fcb)
    return out[:B] if B_pad != B else out


# -----------------------------------------------------------------------------
# General fallback (d_head > 1): correct but unoptimized, gridless whole-block
# kernel on the (B, T, E) layout.  Not used with the module defaults.
# TODO(synk): if ever exercised, grid over the batch and use a head-major
# channel layout instead of stride-d lane slices.
# -----------------------------------------------------------------------------
def _general_att_kernel(x_ref, ew_ref, eb_ref, fcw_ref, fcb_ref, out_ref, *,
                        periodic_dim, num_heads):
    B, T = x_ref.shape
    E = ew_ref.shape[1]
    H = num_heads
    d = E // H

    x = x_ref[...]
    w = ew_ref[...]
    b = eb_ref[...]

    emb = x[:, :, None] * w[None, :, :] + b[None, :, :]            # (B, T, E)
    lane_idx = jax.lax.broadcasted_iota(jnp.int32, (B, T, E), 2)
    emb = jnp.where(lane_idx >= E - periodic_dim, jnp.sin(emb), emb)
    v = jnp.maximum(emb, 0.0)

    scale = float(d) ** 0.5
    vi = [v[..., i::d] for i in range(d)]                           # (B, T, H)
    scores = [[jnp.sum(vi[i] * vi[j], axis=-1) / scale for j in range(d)]
              for i in range(d)]

    out_rows = []
    for i in range(d):
        row = scores[i]
        m = row[0]
        for j in range(1, d):
            m = jnp.maximum(m, row[j])
        exps = [jnp.exp(s - m) for s in row]
        denom = exps[0]
        for j in range(1, d):
            denom = denom + exps[j]
        inv = 1.0 / denom
        acc = exps[0][..., None] * vi[0]
        for j in range(1, d):
            acc = acc + exps[j][..., None] * vi[j]
        out_rows.append(acc * inv[..., None])

    if d == 1:
        mha = out_rows[0]
    else:
        mha = jnp.stack(out_rows, axis=-1).reshape(B, T, E)

    mha = jnp.maximum(mha, 0.0)
    fcw = fcw_ref[...]
    fc = jnp.sum(mha * fcw[None, :, :], axis=-1) + fcb_ref[...]     # (B, T)
    out_ref[...] = jnp.mean(fc, axis=-1, keepdims=True)             # (B, 1)


def _general_forward(x, emb_w_rows, emb_b_rows, fc_w, fc_b, *,
                     periodic_dim, num_heads):
    B, _ = x.shape
    kernel = functools.partial(_general_att_kernel,
                               periodic_dim=periodic_dim, num_heads=num_heads)
    return pl.pallas_call(
        kernel,
        out_shape=jax.ShapeDtypeStruct((B, 1), jnp.float32),
        in_specs=[pl.BlockSpec(memory_space=pltpu.MemorySpace.VMEM)] * 5,
        out_specs=pl.BlockSpec(memory_space=pltpu.MemorySpace.VMEM),
    )(x, emb_w_rows, emb_b_rows, fc_w, fc_b)


# -----------------------------------------------------------------------------
# Public wrapper.
# -----------------------------------------------------------------------------
def temporal_model_forward(x, emb_w_rows, emb_b_rows, fc_w, fc_b, *,
                           periodic_dim, num_heads, batch_tile=4096):
    T, E = emb_w_rows.shape
    assert x.shape[1] == T
    assert E % num_heads == 0, "num_heads must divide the embedding dim"
    assert 0 < periodic_dim <= E
    d_head = E // num_heads

    if d_head == 1:
        TE = T * E
        # One-time parameter relayout (pure layout plumbing; in a real model
        # these slabs would be precomputed once per parameter set).
        w_flat = emb_w_rows.reshape(1, TE).astype(jnp.float32)
        b_flat = emb_b_rows.reshape(1, TE).astype(jnp.float32)
        # Selection matrix with the embedding weight folded in (for the MXU
        # timestep->lane expansion): S_w[t, lane] = w_flat[lane] iff lane//E==t.
        sel = (jnp.arange(TE)[None, :] // E) == jnp.arange(T)[:, None]  # (T,TE)
        s_w = jnp.where(sel, w_flat, 0.0)
        # Linear(E, 1) fused with the mean over T, as an MXU column.
        fcw_col = (jnp.tile(fc_w.reshape(1, E), (1, T)) / float(T)).reshape(TE, 1)
        fcb = fc_b.reshape(1, 1)
        return _temporal_fused_forward(
            x, s_w, b_flat, fcw_col, fcb,
            emb_dim=E, periodic_dim=periodic_dim, batch_tile=batch_tile)

    # TODO(synk): d_head > 1 path is kept for semantic completeness but is
    # unoptimized (gridless, (B, T, E) layout, strided lane slices).
    return _general_forward(x, emb_w_rows, emb_b_rows, fc_w, fc_b,
                            periodic_dim=periodic_dim, num_heads=num_heads)


# -----------------------------------------------------------------------------
# Pure-JAX reference (mirrors the PyTorch forward) for a correctness check.
# -----------------------------------------------------------------------------
def reference_forward(x, emb_w_rows, emb_b_rows, fc_w, fc_b, *,
                      periodic_dim, num_heads):
    B, T = x.shape
    E = emb_w_rows.shape[1]
    d = E // num_heads
    emb = x[:, :, None] * emb_w_rows[None] + emb_b_rows[None]
    lin = emb[..., :-periodic_dim]
    per = jnp.sin(emb[..., -periodic_dim:])
    v = jax.nn.relu(jnp.concatenate([lin, per], axis=-1))
    q = v.reshape(B, T, num_heads, d).transpose(0, 1, 3, 2)          # (B,T,d,H)
    scores = jnp.einsum('btih,btjh->btij', q, q) / (d ** 0.5)
    w = jax.nn.softmax(scores, axis=-1)
    attn = jnp.einsum('btij,btjh->btih', w, q)
    mha = jax.nn.relu(attn.transpose(0, 1, 3, 2).reshape(B, T, E))
    fc = mha @ fc_w[0] + fc_b[0, 0]                                  # (B, T)
    return jnp.mean(fc, axis=-1, keepdims=True)


if __name__ == "__main__":
    # Module hyper-parameters (PyTorch defaults: hidden_dim=16 heads,
    # embedding_dim=1 per head, periodic tail of 4 channels).
    hidden_dim = 16          # == num_heads
    embedding_dim = 1        # per-head dim -> d_head == 1
    periodic_dim = 4
    max_embedding = 100
    E = hidden_dim * embedding_dim                  # total embedding dim = 16

    B, T = 2, 8

    key = jax.random.PRNGKey(0)
    k_emb, k_fcw, k_fcb, k_x, k_xb, k_xc = jax.random.split(key, 6)

    # Deterministic parameter init matching the module's shapes:
    #   embedding weight: xavier_uniform over (max_embedding, E); bias: zeros.
    a = float(np.sqrt(6.0 / (max_embedding + E)))
    emb_table = jax.random.uniform(k_emb, (max_embedding, E), jnp.float32, -a, a)
    emb_bias_table = jnp.zeros((max_embedding, E), jnp.float32)
    bound = 1.0 / float(np.sqrt(E))
    fc_w = jax.random.uniform(k_fcw, (1, E), jnp.float32, -bound, bound)
    fc_b = jax.random.uniform(k_fcb, (1, 1), jnp.float32, -bound, bound)

    # Glue: x_index = arange(T) -> the first T embedding rows.
    emb_w_rows = emb_table[:T]                      # (T, E)
    emb_b_rows = emb_bias_table[:T]                 # (T, E)

    # Input like the script's data range: uniform in [-50, 100).
    x = jax.random.uniform(k_x, (B, T), jnp.float32, -50.0, 100.0)

    out = temporal_model_forward(
        x, emb_w_rows, emb_b_rows, fc_w, fc_b,
        periodic_dim=periodic_dim, num_heads=hidden_dim)
    out = jax.block_until_ready(out)

    ref = reference_forward(
        x, emb_w_rows, emb_b_rows, fc_w, fc_b,
        periodic_dim=periodic_dim, num_heads=hidden_dim)
    np.testing.assert_allclose(np.asarray(out), np.asarray(ref),
                               rtol=1e-4, atol=1e-4)

    # Multiple batch tiles + a partial final block (no wrapper-side pad of x).
    x_big = jax.random.uniform(k_xb, (100, T), jnp.float32, -50.0, 100.0)
    out_big = temporal_model_forward(
        x_big, emb_w_rows, emb_b_rows, fc_w, fc_b,
        periodic_dim=periodic_dim, num_heads=hidden_dim, batch_tile=32)
    out_big = jax.block_until_ready(out_big)
    ref_big = reference_forward(
        x_big, emb_w_rows, emb_b_rows, fc_w, fc_b,
        periodic_dim=periodic_dim, num_heads=hidden_dim)
    np.testing.assert_allclose(np.asarray(out_big), np.asarray(ref_big),
                               rtol=1e-4, atol=1e-4)

    # Default (large) batch tile: >= 2 "parallel" grid steps, partial tail.
    x_huge = jax.random.uniform(k_xc, (1000, T), jnp.float32, -50.0, 100.0)
    out_huge = temporal_model_forward(
        x_huge, emb_w_rows, emb_b_rows, fc_w, fc_b,
        periodic_dim=periodic_dim, num_heads=hidden_dim)
    out_huge = jax.block_until_ready(out_huge)
    ref_huge = reference_forward(
        x_huge, emb_w_rows, emb_b_rows, fc_w, fc_b,
        periodic_dim=periodic_dim, num_heads=hidden_dim)
    np.testing.assert_allclose(np.asarray(out_huge), np.asarray(ref_huge),
                               rtol=1e-4, atol=1e-4)

    print("KERNEL_OK")
</pallas_src>

<mosaic_0001>
module attributes {stable_mosaic.version = 11 : i64} {
  func.func @_temporal_fused_kernel(%arg0: i32, %arg1: memref<8x8xf32, #tpu.memory_space<vmem>>, %arg2: memref<8x128xf32, #tpu.memory_space<vmem>>, %arg3: memref<1x128xf32, #tpu.memory_space<vmem>>, %arg4: memref<128x1xf32, #tpu.memory_space<vmem>>, %arg5: memref<1x1xf32, #tpu.memory_space<smem>>, %arg6: memref<8x1xf32, #tpu.memory_space<vmem>>) attributes {dimension_semantics = [#tpu.dimension_semantics<parallel>], iteration_bounds = array<i64: 1>, scalar_prefetch = 0 : i64, scratch_operands = 0 : i64, tpu.core_type = #tpu.core_type<tc>, window_params = [{transform_indices = @transform_0, window_bounds = array<i64: 8, 8>}, {pipeline_mode = #tpu.pipeline_mode<synchronous>, transform_indices = @transform_1, window_bounds = array<i64: 8, 128>}, {pipeline_mode = #tpu.pipeline_mode<synchronous>, transform_indices = @transform_2, window_bounds = array<i64: 1, 128>}, {pipeline_mode = #tpu.pipeline_mode<synchronous>, transform_indices = @transform_3, window_bounds = array<i64: 128, 1>}, {transform_indices = @transform_4, window_bounds = array<i64: 1, 1>}, {transform_indices = @transform_5, window_bounds = array<i64: 8, 1>}]} {
    %c0 = arith.constant 0 : index
    %c0_0 = arith.constant 0 : index
    %0 = vector.load %arg1[%c0, %c0_0] : memref<8x8xf32, #tpu.memory_space<vmem>>, vector<8x8xf32>
    %c0_1 = arith.constant 0 : index
    %c0_2 = arith.constant 0 : index
    %1 = vector.load %arg2[%c0_1, %c0_2] : memref<8x128xf32, #tpu.memory_space<vmem>>, vector<8x128xf32>
    %cst = arith.constant dense<0.000000e+00> : vector<8x128xf32>
    %2 = tpu.matmul %0, %1, %cst {dimension_numbers = #tpu.dot_dimension_numbers<[1], [0], [0], [1], [0, 0, 1, 1], [], []>, precision = #tpu.contract_precision<fp32>} : vector<8x8xf32>, vector<8x128xf32>, vector<8x128xf32> -> vector<8x128xf32>
    %c0_3 = arith.constant 0 : index
    %c0_4 = arith.constant 0 : index
    %3 = vector.load %arg3[%c0_3, %c0_4] : memref<1x128xf32, #tpu.memory_space<vmem>>, vector<1x128xf32>
    %4 = vector.broadcast %3 : vector<1x128xf32> to vector<8x128xf32>
    %5 = arith.addf %2, %4 : vector<8x128xf32>
    %6 = tpu.iota {dimensions = array<i32: 1>} : vector<1x128xi32>
    %c16_i32 = arith.constant 16 : i32
    %c0_i32 = arith.constant 0 : i32
    %7 = arith.cmpi eq, %c16_i32, %c0_i32 : i32
    %c1_i32 = arith.constant 1 : i32
    %8 = arith.select %7, %c1_i32, %c16_i32 : i32
    %9 = vector.broadcast %8 : i32 to vector<1x128xi32>
    %10 = arith.remsi %6, %9 : vector<1x128xi32>
    %c0_i32_5 = arith.constant 0 : i32
    %11 = vector.broadcast %c0_i32_5 : i32 to vector<1x128xi32>
    %12 = arith.cmpi ne, %10, %11 : vector<1x128xi32>
    %c0_i32_6 = arith.constant 0 : i32
    %13 = vector.broadcast %c0_i32_6 : i32 to vector<1x128xi32>
    %14 = arith.cmpi slt, %10, %13 : vector<1x128xi32>
    %c0_i32_7 = arith.constant 0 : i32
    %15 = arith.cmpi slt, %8, %c0_i32_7 : i32
    %16 = vector.broadcast %15 : i1 to vector<1x128xi1>
    %17 = vector.broadcast %16 : vector<1x128xi1> to vector<1x128xi1>
    %18 = arith.xori %14, %17 : vector<1x128xi1>
    %19 = arith.andi %18, %12 : vector<1x128xi1>
    %20 = vector.broadcast %8 : i32 to vector<1x128xi32>
    %21 = arith.addi %10, %20 : vector<1x128xi32>
    %22 = arith.select %19, %21, %10 : vector<1x128xi1>, vector<1x128xi32>
    %c12_i32 = arith.constant 12 : i32
    %23 = vector.broadcast %c12_i32 : i32 to vector<1x128xi32>
    %24 = arith.cmpi sge, %22, %23 : vector<1x128xi32>
    %25 = math.sin %5 : vector<8x128xf32>
    %26 = vector.shape_cast %24 : vector<1x128xi1> to vector<1x128xi1>
    %27 = vector.broadcast %26 : vector<1x128xi1> to vector<8x128xi1>
    %28 = arith.select %27, %25, %5 : vector<8x128xi1>, vector<8x128xf32>
    %cst_8 = arith.constant 0.000000e+00 : f32
    %29 = vector.broadcast %cst_8 : f32 to vector<8x128xf32>
    %30 = arith.maximumf %28, %29 : vector<8x128xf32>
    %c0_9 = arith.constant 0 : index
    %c0_10 = arith.constant 0 : index
    %31 = vector.load %arg4[%c0_9, %c0_10] : memref<128x1xf32, #tpu.memory_space<vmem>>, vector<128x1xf32>
    %cst_11 = arith.constant dense<0.000000e+00> : vector<8x1xf32>
    %32 = tpu.matmul %30, %31, %cst_11 {dimension_numbers = #tpu.dot_dimension_numbers<[1], [0], [0], [1], [0, 0, 1, 1], [], []>, precision = #tpu.contract_precision<fp32>} : vector<8x128xf32>, vector<128x1xf32>, vector<8x1xf32> -> vector<8x1xf32>
    %c0_12 = arith.constant 0 : index
    %c0_13 = arith.constant 0 : index
    %33 = memref.load %arg5[%c0_12, %c0_13] : memref<1x1xf32, #tpu.memory_space<smem>>
    %34 = vector.broadcast %33 : f32 to vector<8x1xf32>
    %35 = arith.addf %32, %34 : vector<8x1xf32>
    %c0_14 = arith.constant 0 : index
    %c0_15 = arith.constant 0 : index
    %36 = vector.load %arg6[%c0_14, %c0_15] : memref<8x1xf32, #tpu.memory_space<vmem>>, vector<8x1xf32>
    tpu.vector_store %arg6[%c0_14, %c0_15], %35 {strides = array<i32>} : memref<8x1xf32, #tpu.memory_space<vmem>>, vector<8x1xf32>,
    return
  }
  func.func @transform_0(%arg0: i32) -> (i32, i32) {
    %c0_i32 = arith.constant 0 : i32
    %c0_i32_0 = arith.constant 0 : i32
    return %arg0, %c0_i32 : i32, i32
  }
  func.func @transform_1(%arg0: i32) -> (i32, i32) {
    %c0_i32 = arith.constant 0 : i32
    %c0_i32_0 = arith.constant 0 : i32
    %c0_i32_1 = arith.constant 0 : i32
    return %c0_i32, %c0_i32_0 : i32, i32
  }
  func.func @transform_2(%arg0: i32) -> (i32, i32) {
    %c0_i32 = arith.constant 0 : i32
    %c0_i32_0 = arith.constant 0 : i32
    %c0_i32_1 = arith.constant 0 : i32
    return %c0_i32, %c0_i32_0 : i32, i32
  }
  func.func @transform_3(%arg0: i32) -> (i32, i32) {
    %c0_i32 = arith.constant 0 : i32
    %c0_i32_0 = arith.constant 0 : i32
    %c0_i32_1 = arith.constant 0 : i32
    return %c0_i32, %c0_i32_0 : i32, i32
  }
  func.func @transform_4(%arg0: i32) -> (i32, i32) {
    %c0_i32 = arith.constant 0 : i32
    %c0_i32_0 = arith.constant 0 : i32
    %c0_i32_1 = arith.constant 0 : i32
    return %c0_i32, %c0_i32_0 : i32, i32
  }
  func.func @transform_5(%arg0: i32) -> (i32, i32) {
    %c0_i32 = arith.constant 0 : i32
    %c0_i32_0 = arith.constant 0 : i32
    return %arg0, %c0_i32 : i32, i32
  }
}

</mosaic_0001>

<bundles_post_ra>
// kernel: tpu_custom_call.1
= control target key start
LH: loop header
LB: loop body
LE: loop exit
PB: predicated region body
PF: predicated region fallthrough
CT: control target
= control target key end

     0   :  { %vm27_vm0 = vcmask 64512   ;;  %v727_v44 = vmov 683565275   ;;  %v728_v46 = vmov 2475754826   ;;  %s1137_s1 = inlined_call_operand.vmem [shape: f32[8,128], index: 1, kind: input, shape index: {}]   ;;  %s1138_s0 = inlined_call_operand.vmem [shape: f32[8,8], index: 0, kind: input, shape index: {}]   ;;  %s1139_s2 = inlined_call_operand.vmem [shape: f32[1,128], index: 2, kind: input, shape index: {}]   ;;  %s1140_s3 = inlined_call_operand.vmem [shape: f32[128,1], index: 3, kind: input, shape index: {}]   ;;  %s1141_s4 = inlined_call_operand.<no memory space> [shape: f32[1,1], index: 4, kind: input, shape index: {}]   ;;  %s1142_s5 = inlined_call_operand.vmem [shape: f32[8,1], index: 5, kind: output, shape index: {}]  }
   0x1   :  { %v22_v0 = vld [vmem:[%s1137_s1] sm:$0xff]  ;;  %v366_v34 = vld [vmem:[%s1140_s3 + $0x78] sm:$0xff]  ;;  %v365_v37 = vld [vmem:[%s1140_s3 + $0x70] sm:$0xff]  ;;  %v729_v49 = vmov 2131351028  }
   0x2   :  { %v21_v1 = vld [vmem:[%s1138_s0] sm:$0xff]  ;;  %v46_v2 = vand.u32 4294901760, %v22_v0  ;;  %v784_v35 = vand.u32 4294901760, %v366_v34  ;;  %v792_v41 = vand.u32 4294901760, %v365_v37  ;;  %v730_v51 = vmov 2102212464  }
   0x3   :  { %v29_v3 = vsel %vm27_vm0, %v21_v1, 0  ;;  %v726_v15 = vld [vmem:[%s1139_s2] ss:$0 sm:$0xff]  ;;  %v731_v53 = vmov 920167782   ;;  %v364_v59 = vld [vmem:[%s1140_s3 + $0x68] sm:$0xff] }
   0x4   :  { %v48_v4 = vand.u32 4294901760, %v29_v3  ;;  %47 = vmatpush.msra.mxu0 %v46_v2  ;;  %v73_v5 = vsub.f32 %v22_v0, %v46_v2  ;;  %v790_v40 = vsub.f32 %v366_v34, %v784_v35  ;;  %370 = vmatpush.msra.mxu2 %v784_v35  ;;  %v732_v61 = vmov 1326507024  }
   0x6   :  { %v49_v6 = vsub.f32 %v29_v3, %v48_v4  ;;  %100 = vmatpush.msrb.mxu0 %v73_v5  ;;  %v74_v7 = vand.u32 4294901760, %v73_v5  ;;  %372 = vmatpush.msra.mxu2 %v792_v41 }
   0x8   :  { %v50_v8 = vand.u32 4294901760, %v49_v6  ;;  %v75_v9 = vsub.f32 %v73_v5, %v74_v7  ;;  %v810_v5 = vsub.f32 %v365_v37, %v792_v41 }
   0xa   :  { %v51_v10 = vsub.f32 %v49_v6, %v50_v8  ;;  %v76_v11 = vand.u32 4294901760, %v75_v9 }
   0xc   :  { %v52_v12 = vand.u32 4294901760, %v51_v10  ;;  %77 = vmatpush.msra.mxu1 %v76_v11 }
   0xd   :  { %79 = vmatmul.f32.vlgmr.msra.gmra.mxu1 %v48_v4 }
   0xe   :  { %53 = vmatmul.f32.vlgmr.msra.gmra.mxu0 %v52_v12  ;;  %123 = vmatpush.msrb.mxu1 %v46_v2 }
   0xf   :  { %149 = vmatpush.msra.mxu0 %v74_v7 }
  0x10   :  { %171 = vmatpush.msra.mxu1 %v46_v2  ;;  %v412_v2 = vand.u32 4294901760, %v790_v40 }
  0x15   :  { %127 = vmatmul.f32.vlgmr.msrb.gmra.mxu1 %v50_v8 }
  0x16   :  { %103 = vmatmul.f32.vlgmr.msrb.gmra.mxu0 %v49_v6  ;;  %566 = vmatpush.msrb.mxu1 %v784_v35  ;;  %v812_v6 = vand.u32 4294901760, %v364_v59 }
  0x17   :  { %513 = vmatpush.msrb.mxu0 %v790_v40 }
  0x18   :  { %568 = vmatpush.msrb.mxu1 %v792_v41  ;;  %374 = vmatpush.msra.mxu2 %v812_v6 }
  0x19   :  { %516 = vmatpush.msrb.mxu0 %v810_v5 }
  0x1a   :  { %570 = vmatpush.msrb.mxu1 %v812_v6 }
  0x1d   :  { %173 = vmatmul.f32.vlgmr.msra.gmra.mxu1 %v48_v4 }
  0x1e   :  { %151 = vmatmul.f32.vlgmr.msra.gmra.mxu0 %v48_v4 }
  0x8a   :  { %v80_v14 = vpop.f32.mrf.mxu1 }
  0x8b   :  { %v54_v13 = vpop.f32.mrf.mxu0 }
  0x8c   :  { %v55_v16 = vadd.f32 %v726_v15, %v54_v13 }
  0x8e   :  { %v81_v19 = vadd.f32 %v80_v14, %v55_v16  ;;  %v413_v14 = vsub.f32 %v790_v40, %v412_v2 }
  0x92   :  { %v128_v18 = vpop.f32.mrf.mxu1 }
  0x93   :  { %v104_v17 = vpop.f32.mrf.mxu0 }
  0x94   :  { %v105_v20 = vadd.f32 %v104_v17, %v81_v19  ;;  %v418_v17 = vand.u32 4294901760, %v810_v5  ;;  %v832_v19 = vld [vmem:[%s1140_s3 + $0x58] sm:$0xff] }
  0x95   :  { %v846_v34 = vand.u32 4294901760, %v832_v19 }
  0x96   :  { %v129_v21 = vadd.f32 %v128_v18, %v105_v20  ;;  %v363_v18 = vld [vmem:[%s1140_s3 + $0x60] sm:$0xff] }
  0x9a   :  { %v174_v23 = vpop.f32.mrf.mxu1 }
  0x9b   :  { %v152_v22 = vpop.f32.mrf.mxu0 }
  0x9c   :  { %v153_v24 = vadd.f32 %v152_v22, %v129_v21 }
  0x9e   :  { %v773_v25 = vadd.f32 %v174_v23, %v153_v24  ;;  %v414_v23 = vand.u32 4294901760, %v413_v14 }
  0xa0   :  { %v192_v26 = vand.u32 2147483647, %v773_v25  ;;  %v195_v27 = vand.u32 2139095040, %v773_v25  ;;  %415 = vmatpush.msra.mxu3 %v414_v23  ;;  %vm194_vm13 = vcmp.lt.s32.totalorder %v773_v25, 0 }
  0xa2   :  { %v196_v28 = vshrl.u32 %v195_v27, 23  ;;  %v199_v29 = vand.u32 8388607, %v192_v26  ;;  %vm1096_vm14 = vcmp.le.f32.partialorder %v192_v26, 0.7853982 }
  0xa4   :  { %v716_v30 = vadd.s32 4294967169, %v196_v28  ;;  %v200_v31 = vor.u32 8388608, %v199_v29 }
  0xa6   :  { %v202_v32 = vadd.s32 1, %v716_v30  ;;  %v779_v33 = vshll.u32 %v200_v31, 8  ;;  %v419_v30 = vsub.f32 %v810_v5, %v418_v17  ;;  %v841_v31 = vsub.f32 %v364_v59, %v812_v6 }
  0xa8   :  { %vm203_vm1 = vcmp.gt.s32.totalorder %v202_v32, 0  ;;  %v797_v42 = vand.u32 65535, %v779_v33  ;;  %v800_v48 = vshrl.u32 %v779_v33, 16  ;;  %519 = vmatpush.msrb.mxu0 %v841_v31 }
  0xa9   :  { %v204_v36 = vsel %vm203_vm1, %v202_v32, 0  ;;  %v843_v32 = vand.u32 4294901760, %v363_v18 }
  0xaa   :  { %v205_v38 = vshrl.u32 %v204_v36, 5  ;;  %v206_v39 = vand.u32 31, %v204_v36 }
  0xab   :  { %376 = vmatpush.msra.mxu2 %v843_v32  ;;  %572 = vmatpush.msrb.mxu1 %v843_v32 }
  0xac   :  { %v207_v43 = vsub.s32 32, %v206_v39  ;;  %v209_v45 = vshll.u32 %v727_v44, %v206_v39  ;;  %v212_v47 = vshll.u32 %v728_v46, %v206_v39  ;;  %v215_v50 = vshll.u32 %v729_v49, %v206_v39 }
  0xad   :  { %v218_v52 = vshll.u32 %v730_v51, %v206_v39  ;;  %v221_v54 = vshll.u32 %v731_v53, %v206_v39  ;;  %vm224_vm2 = vcmp.lt.s32.totalorder %v205_v38, 1  ;;  %vm226_vm3 = vcmp.lt.s32.totalorder %v205_v38, 3  ;;  %378 = vmatpush.msra.mxu2 %v846_v34  ;;  %574 = vmatpush.msrb.mxu1 %v846_v34 }
  0xae   :  { %v208_v55 = vshrl.u32 %v727_v44, %v207_v43  ;;  %v210_v56 = vshrl.u32 %v728_v46, %v207_v43  ;;  %v213_v57 = vshrl.u32 %v729_v49, %v207_v43  ;;  %v216_v58 = vshrl.u32 %v730_v51, %v207_v43 }
  0xaf   :  { %v219_v60 = vshrl.u32 %v731_v53, %v207_v43  ;;  %v222_v62 = vshrl.u32 %v732_v61, %v207_v43  ;;  %vm227_vm4 = vcmp.lt.s32.totalorder %v205_v38, 4  ;;  %vm225_vm5 = vcmp.lt.s32.totalorder %v205_v38, 2 }
  0xb0   :  { %v211_v63 = vor.u32 %v210_v56, %v209_v45  ;;  %v214_v0 = vor.u32 %v213_v57, %v212_v47  ;;  %v217_v1 = vor.u32 %v216_v58, %v215_v50  ;;  %v424_v56 = vand.u32 4294901760, %v841_v31 }
  0xb1   :  { %v220_v3 = vor.u32 %v219_v60, %v218_v52  ;;  %v223_v4 = vor.u32 %v222_v62, %v221_v54  ;;  %v733_v57 = vmov 0   ;;  %v867_v60 = vsub.f32 %v363_v18, %v843_v32 }
  0xb2   :  { %v228_v7 = vsel %vm224_vm2, %v208_v55, %v211_v63  ;;  %v229_v8 = vsel %vm227_vm4, %v217_v1, 2102212464  ;;  %v232_v9 = vsel %vm224_vm2, %v211_v63, %v214_v0  ;;  %v236_v10 = vsel %vm224_vm2, %v214_v0, %v217_v1 }
  0xb3   :  { %v230_v11 = vsel %vm226_vm3, %v214_v0, %v229_v8  ;;  %v233_v12 = vsel %vm227_vm4, %v220_v3, 920167782  ;;  %v237_v13 = vsel %vm227_vm4, %v223_v4, 1326507024  ;;  %v420_v55 = vand.u32 4294901760, %v419_v30  ;;  %v361_v0 = vld [vmem:[%s1140_s3 + $0x50] sm:$0xff]  ;;  %522 = vmatpush.msrb.mxu0 %v867_v60 }
  0xb4   :  { %v234_v15 = vsel %vm226_vm3, %v217_v1, %v233_v12  ;;  %v238_v16 = vsel %vm226_vm3, %v220_v3, %v237_v13  ;;  %v835_v20 = vsel %vm225_vm5, %v228_v7, %v230_v11  ;;  %v425_v63 = vsub.f32 %v841_v31, %v424_v56  ;;  %v360_v1 = vld [vmem:[%s1140_s3 + $0x48] sm:$0xff]  ;;  %v359_v8 = vld [vmem:[%s1140_s3 + $0x40] sm:$0xff] }
  0xb5   :  { %v235_v21 = vsel %vm225_vm5, %v232_v9, %v234_v15  ;;  %v239_v22 = vsel %vm225_vm5, %v236_v10, %v238_v16  ;;  %421 = vmatpush.msra.mxu3 %v420_v55  ;;  %v358_v9 = vld [vmem:[%s1140_s3 + $0x38] sm:$0xff]  ;;  %v430_v13 = vand.u32 4294901760, %v867_v60  ;;  %v890_v15 = vsub.f32 %v832_v19, %v846_v34 }
  0xb6   :  { %v243_v24 = vand.u32 65535, %v239_v22  ;;  %v244_v27 = vshrl.u32 %v239_v22, 16  ;;  %v265_v28 = vand.u32 65535, %v235_v21  ;;  %v266_v29 = vshrl.u32 %v235_v21, 16 }
  0xb7   :  { %v426_v12 = vand.u32 4294901760, %v425_v63  ;;  %v892_v16 = vand.u32 4294901760, %v361_v0  ;;  %v894_v18 = vand.u32 4294901760, %v360_v1  ;;  %v431_v22 = vsub.f32 %v867_v60, %v430_v13  ;;  %525 = vmatpush.msrb.mxu0 %v890_v15 }
  0xb8   :  { %v245_v36 = vmul.u32 %v243_v24, %v797_v42  ;;  %v246_v37 = vmul.u32 %v244_v27, %v797_v42  ;;  %v247_v38 = vmul.u32 %v243_v24, %v800_v48  ;;  %v248_v39 = vmul.u32 %v244_v27, %v800_v48 }
  0xb9   :  { %v267_v43 = vmul.u32 %v265_v28, %v797_v42  ;;  %v268_v44 = vmul.u32 %v266_v29, %v797_v42  ;;  %v855_v45 = vmul.u32 %v265_v28, %v800_v48  ;;  %v270_v46 = vmul.u32 %v266_v29, %v800_v48  ;;  %427 = vmatpush.msra.mxu3 %v426_v12 }
  0xba   :  { %v249_v47 = vshll.u32 %v246_v37, 16  ;;  %v250_v49 = vshrl.u32 %v246_v37, 16  ;;  %v251_v50 = vshll.u32 %v247_v38, 16  ;;  %v252_v51 = vshrl.u32 %v247_v38, 16  ;;  %380 = vmatpush.msra.mxu2 %v892_v16  ;;  %576 = vmatpush.msrb.mxu1 %v892_v16 }
  0xbb   :  { %v271_v52 = vshll.u32 %v268_v44, 16  ;;  %v272_v53 = vshrl.u32 %v268_v44, 16  ;;  %v273_v54 = vshll.u32 %v855_v45, 16  ;;  %v274_v42 = vshrl.u32 %v855_v45, 16 }
  0xbc   :  { %vm253_vm6 = vc.u32 %v245_v36, %v249_v47  ;;  %v255_v48 = vadd.s32 %v249_v47, %v245_v36  ;;  %v899_v23 = vand.u32 4294901760, %v359_v8  ;;  %v901_v24 = vand.u32 4294901760, %v358_v9  ;;  %382 = vmatpush.msra.mxu2 %v894_v18  ;;  %v356_v47 = vld [vmem:[%s1140_s3 + $0x28] sm:$0xff]  ;;  %578 = vmatpush.msrb.mxu1 %v894_v18 }
  0xbd   :  { %v254_v58 = vsel %vm253_vm6, 1, %v733_v57  ;;  %vm275_vm7 = vc.u32 %v267_v43, %v271_v52  ;;  %v277_v59 = vadd.s32 %v271_v52, %v267_v43  ;;  %v436_v28 = vand.u32 4294901760, %v890_v15  ;;  %v355_v52 = vld [vmem:[%s1140_s3 + $0x20] sm:$0xff] }
  0xbe   :  { %v256_v61 = vadd.s32 %v254_v58, %v248_v39  ;;  %vm257_vm8 = vc.u32 %v255_v48, %v251_v50  ;;  %v276_v62 = vsel %vm275_vm7, 1, %v733_v57  ;;  %v905_v19 = vsub.f32 %v361_v0, %v892_v16  ;;  %384 = vmatpush.msra.mxu2 %v899_v23  ;;  %v354_v58 = vld [vmem:[%s1140_s3 + $0x18] sm:$0xff]  ;;  %580 = vmatpush.msrb.mxu1 %v899_v23 }
  0xbf   :  { %v258_v3 = vsel %vm257_vm8, 1, %v733_v57  ;;  %v278_v4 = vadd.s32 %v276_v62, %v270_v46  ;;  %vm279_vm9 = vc.u32 %v277_v59, %v273_v54  ;;  %v878_v7 = vadd.s32 %v277_v59, %v273_v54  ;;  %v357_v46 = vld [vmem:[%s1140_s3 + $0x30] sm:$0xff] }
  0xc0   :  { %v260_v10 = vadd.s32 %v258_v3, %v256_v61  ;;  %v280_v11 = vsel %vm279_vm9, 1, %v733_v57  ;;  %v908_v29 = vsub.f32 %v360_v1, %v894_v18  ;;  %v432_v36 = vand.u32 4294901760, %v431_v22  ;;  %528 = vmatpush.msrb.mxu0 %v905_v19  ;;  %v353_v59 = vld [vmem:[%s1140_s3 + $0x10] sm:$0xff]  ;;  %386 = vmatpush.msra.mxu2 %v901_v24  ;;  %v352_v1 = vld [vmem:[%s1140_s3 + $0x8] sm:$0xff]  ;;  %v351_v3 = vld [vmem:[%s1140_s3] sm:$0xff] }
  0xc1   :  { %v282_v14 = vadd.s32 %v280_v11, %v278_v4  ;;  %v915_v37 = vsub.f32 %v359_v8, %v899_v23  ;;  %v918_v38 = vsub.f32 %v358_v9, %v901_v24  ;;  %v437_v43 = vsub.f32 %v890_v15, %v436_v28  ;;  %582 = vmatpush.msrb.mxu1 %v901_v24 }
  0xc2   :  { %v261_v21 = vadd.s32 %v260_v10, %v250_v49  ;;  %v442_v44 = vand.u32 4294901760, %v905_v19  ;;  %v448_v45 = vand.u32 4294901760, %v908_v29  ;;  %v285_v49 = vmul.u32 %v779_v33, %v835_v20  ;;  %433 = vmatpush.msra.mxu3 %v432_v36  ;;  %531 = vmatpush.msrb.mxu0 %v908_v29 }
  0xc3   :  { %v283_v27 = vadd.s32 %v282_v14, %v272_v53  ;;  %v454_v50 = vand.u32 4294901760, %v915_v37  ;;  %v438_v54 = vand.u32 4294901760, %v437_v43  ;;  %v958_v55 = vand.u32 4294901760, %v357_v46 }
  0xc4   :  { %v912_v30 = vadd.s32 %v261_v21, %v252_v51  ;;  %v460_v51 = vand.u32 4294901760, %v918_v38  ;;  %v443_v33 = vsub.f32 %v905_v19, %v442_v44  ;;  %v449_v20 = vsub.f32 %v908_v29, %v448_v45  ;;  %534 = vmatpush.msrb.mxu0 %v915_v37 }
  0xc5   :  { %v284_v39 = vadd.s32 %v283_v27, %v274_v42  ;;  %v455_v42 = vsub.f32 %v915_v37, %v454_v50  ;;  %v960_v57 = vand.u32 4294901760, %v356_v47  ;;  %439 = vmatpush.msra.mxu3 %v438_v54  ;;  %v972_v0 = vand.u32 4294901760, %v355_v52  ;;  %388 = vmatpush.msra.mxu2 %v958_v55 }
  0xc6   :  { %vm287_vm10 = vc.u32 %v912_v30, %v878_v7  ;;  %v461_v48 = vsub.f32 %v918_v38, %v460_v51  ;;  %v444_v62 = vand.u32 4294901760, %v443_v33  ;;  %v450_v63 = vand.u32 4294901760, %v449_v20  ;;  %537 = vmatpush.msrb.mxu0 %v918_v38  ;;  %584 = vmatpush.msrb.mxu1 %v958_v55 }
  0xc7   :  { %v288_v53 = vadd.s32 1, %v284_v39  ;;  %v456_v8 = vand.u32 4294901760, %v455_v42  ;;  %v982_v10 = vsub.f32 %v357_v46, %v958_v55  ;;  %v987_v11 = vsub.f32 %v356_v47, %v960_v57  ;;  %390 = vmatpush.msra.mxu2 %v960_v57 }
  0xc8   :  { %v462_v9 = vand.u32 4294901760, %v461_v48  ;;  %445 = vmatpush.msra.mxu3 %v444_v62  ;;  %v990_v12 = vsub.f32 %v355_v52, %v972_v0  ;;  %v992_v14 = vand.u32 4294901760, %v354_v58  ;;  %v995_v21 = vand.u32 4294901760, %v353_v59  ;;  %586 = vmatpush.msrb.mxu1 %v960_v57 }
  0xc9   :  { %v289_v61 = vsel %vm287_vm10, %v288_v53, %v284_v39  ;;  %v466_v27 = vand.u32 4294901760, %v982_v10  ;;  %v998_v36 = vand.u32 4294901760, %v352_v1  ;;  %v1000_v39 = vand.u32 4294901760, %v351_v3  ;;  %540 = vmatpush.msrb.mxu0 %v982_v10  ;;  %392 = vmatpush.msra.mxu2 %v972_v0 }
  0xca   :  { %v290_v4 = vadd.s32 %v289_v61, %v285_v49  ;;  %451 = vmatpush.msra.mxu3 %v450_v63  ;;  %v472_v43 = vand.u32 4294901760, %v987_v11  ;;  %v478_v46 = vand.u32 4294901760, %v990_v12  ;;  %v1007_v47 = vsub.f32 %v354_v58, %v992_v14  ;;  %588 = vmatpush.msrb.mxu1 %v972_v0 }
  0xcb   :  { %v1010_v49 = vsub.f32 %v353_v59, %v995_v21  ;;  %v467_v53 = vsub.f32 %v982_v10, %v466_v27  ;;  %v1019_v54 = vsub.f32 %v352_v1, %v998_v36  ;;  %v1022_v33 = vsub.f32 %v351_v3, %v1000_v39  ;;  %543 = vmatpush.msrb.mxu0 %v987_v11 }
  0xcc   :  { %v291_v22 = vadd.s32 536870912, %v290_v4  ;;  %457 = vmatpush.msra.mxu3 %v456_v8  ;;  %v473_v20 = vsub.f32 %v987_v11, %v472_v43  ;;  %v479_v42 = vsub.f32 %v990_v12, %v478_v46  ;;  %v484_v48 = vand.u32 4294901760, %v1007_v47  ;;  %394 = vmatpush.msra.mxu2 %v992_v14 }
  0xcd   :  { %v1143_v58 = vand.u32 4294901760, %v1010_v49  ;;  %v468_v61 = vand.u32 4294901760, %v467_v53  ;;  %v496_v1 = vand.u32 4294901760, %v1019_v54  ;;  %546 = vmatpush.msrb.mxu0 %v990_v12  ;;  %590 = vmatpush.msrb.mxu1 %v992_v14  ;;  %v286_v40 = vadd.s32 %v878_v7, %v912_v30 }
  0xce   :  { %v1013_v52 = vshrl.u32 %v291_v22, 30  ;;  %463 = vmatpush.msra.mxu3 %v462_v9  ;;  %v474_v62 = vand.u32 4294901760, %v473_v20  ;;  %v485_v63 = vsub.f32 %v1007_v47, %v484_v48  ;;  %v480_v8 = vand.u32 4294901760, %v479_v42  ;;  %396 = vmatpush.msra.mxu2 %v995_v21 }
  0xcf   :  { %v491_v9 = vsub.f32 %v1010_v49, %v1143_v58  ;;  %v502_v22 = vand.u32 4294901760, %v1022_v33  ;;  %549 = vmatpush.msrb.mxu0 %v1007_v47  ;;  %592 = vmatpush.msrb.mxu1 %v995_v21  ;;  %v497_v20 = vsub.f32 %v1019_v54, %v496_v1  ;;  %v1146_v30 = vand.u32 4294901760, %v1010_v49 }
  0xd0   :  { %v293_v59 = vshll.u32 %v1013_v52, 30  ;;  %469 = vmatpush.msra.mxu3 %v468_v61  ;;  %398 = vmatpush.msra.mxu2 %v998_v36  ;;  %v177_v37 = vlaneseq  ;;  %vm335_vm3 = vweird.f32 %v773_v25  ;;  %vm710_vm4 = vcmask 7168  }
  0xd1   :  { %552 = vmatpush.msrb.mxu0 %v1010_v49  ;;  %594 = vmatpush.msrb.mxu1 %v998_v36  ;;  %v492_v61 = vand.u32 4294901760, %v491_v9  ;;  %v503_v58 = vsub.f32 %v1022_v33, %v502_v22 }
  0xd2   :  { %v294_v3 = vsub.s32 %v290_v4, %v293_v59  ;;  %475 = vmatpush.msra.mxu3 %v474_v62  ;;  %v486_v4 = vand.u32 4294901760, %v485_v63  ;;  %400 = vmatpush.msra.mxu2 %v1000_v39  ;;  %v498_v63 = vand.u32 4294901760, %v497_v20 }
  0xd3   :  { %555 = vmatpush.msrb.mxu0 %v1019_v54  ;;  %596 = vmatpush.msrb.mxu1 %v1000_v39 }
  0xd4   :  { %vm295_vm11 = vcmp.lt.s32.totalorder %v294_v3, 0  ;;  %v296_v53 = vsub.s32 0, %v294_v3  ;;  %481 = vmatpush.msra.mxu3 %v480_v8  ;;  %607 = vmatpush.msrb.mxu2 %v412_v2  ;;  %v504_v8 = vand.u32 4294901760, %v503_v58 }
  0xd5   :  { %558 = vmatpush.msrb.mxu0 %v1022_v33 }
  0xd6   :  { %v297_v42 = vsel %vm295_vm11, %v296_v53, %v294_v3  ;;  %487 = vmatpush.msra.mxu3 %v486_v4  ;;  %611 = vmatpush.msrb.mxu2 %v418_v17 }
  0xd7   :  { %v298_v59 = vclz %v297_v42 }
  0xd8   :  { %493 = vmatpush.msra.mxu3 %v492_v61  ;;  %615 = vmatpush.msrb.mxu2 %v424_v56 }
  0xd9   :  { %v717_v62 = vadd.s32 4294967294, %v298_v59 }
  0xda   :  { %499 = vmatpush.msra.mxu3 %v498_v63  ;;  %619 = vmatpush.msrb.mxu2 %v430_v13 }
  0xdb   :  { %vm718_vm12 = vcmp.lt.s32.totalorder %v717_v62, 0 }
  0xdc   :  { %v301_v9 = vsel %vm718_vm12, 0, %v717_v62  ;;  %505 = vmatpush.msra.mxu3 %v504_v8  ;;  %623 = vmatpush.msrb.mxu2 %v436_v28 }
  0xdd   :  { %v302_v2 = vsub.s32 32, %v301_v9  ;;  %v306_v53 = vsub.s32 4294967266, %v301_v9  ;;  %v303_v5 = vshll.u32 %v294_v3, %v301_v9 }
  0xde   :  { %674 = vmatpush.msrb.mxu3 %v784_v35  ;;  %627 = vmatpush.msrb.mxu2 %v442_v44 }
  0xdf   :  { %v304_v17 = vshrl.u32 %v286_v40, %v302_v2  ;;  %v307_v4 = vadd.s32 127, %v306_v53 }
  0xe0   :  { %676 = vmatpush.msrb.mxu3 %v792_v41  ;;  %631 = vmatpush.msrb.mxu2 %v448_v45 }
  0xe1   :  { %v305_v31 = vor.u32 %v304_v17, %v303_v5  ;;  %v308_v56 = vshll.u32 %v307_v4, 23 }
  0xe2   :  { %678 = vmatpush.msrb.mxu3 %v812_v6  ;;  %635 = vmatpush.msrb.mxu2 %v454_v50 }
  0xe3   :  { %v309_v7 = vor.u32 4788187, %v308_v56  ;;  %v312_v13 = vcvt.s32.f32 %v305_v31 }
  0xe4   :  { %680 = vmatpush.msrb.mxu3 %v843_v32  ;;  %639 = vmatpush.msrb.mxu2 %v460_v51 }
  0xe5   :  { %v310_v60 = vand.u32 2147483647, %v309_v7 }
  0xe6   :  { %682 = vmatpush.msrb.mxu3 %v846_v34  ;;  %643 = vmatpush.msrb.mxu2 %v466_v27  ;;  %v316_v34 = vsub.s32 4, %v1013_v52 }
  0xe7   :  { %v313_v35 = vmul.f32 %v312_v13, %v310_v60 }
  0xe8   :  { %684 = vmatpush.msrb.mxu3 %v892_v16  ;;  %647 = vmatpush.msrb.mxu2 %v472_v43  ;;  %v317_v19 = vsel %vm194_vm13, %v316_v34, %v1013_v52 }
  0xe9   :  { %v314_v41 = vxor.u32 2147483648, %v313_v35  ;;  %v319_v38 = vsel %vm1096_vm14, 0, %v317_v19 }
  0xea   :  { %686 = vmatpush.msrb.mxu3 %v894_v18  ;;  %651 = vmatpush.msrb.mxu2 %v478_v46  ;;  %v336_v50 = vadd.s32 3, %v319_v38 }
  0xeb   :  { %v315_v32 = vsel %vm194_vm13, %v314_v41, %v313_v35 }
  0xec   :  { %v318_v15 = vsel %vm1096_vm14, %v773_v25, %v315_v32  ;;  %688 = vmatpush.msrb.mxu3 %v899_v23  ;;  %655 = vmatpush.msrb.mxu2 %v484_v48  ;;  %v337_v27 = vand.u32 3, %v336_v50 }
  0xed   :  { %v320_v16 = vmul.f32 %v318_v15, %v318_v15 }
  0xee   :  { %690 = vmatpush.msrb.mxu3 %v901_v24  ;;  %659 = vmatpush.msrb.mxu2 %v1146_v30  ;;  %vm339_vm15 = vcmp.eq.s32.totalorder %v337_v27, 0  ;;  %vm342_vm0 = vcmp.eq.s32.totalorder %v337_v27, 2  ;;  %vm338_vm2 = vcmp.lt.s32.totalorder %v337_v27, 2 }
  0xef   :  { %v328_v26 = vmul.f32 -0.00019511016, %v320_v16  ;;  %v321_v28 = vmul.f32 -0.001358992, %v320_v16 }
  0xf0   :  { %692 = vmatpush.msrb.mxu3 %v958_v55  ;;  %663 = vmatpush.msrb.mxu2 %v496_v1  ;;  %v178_v55 = vand.u32 127, %v177_v37 }
  0xf1   :  { %v329_v29 = vadd.f32 0.008332121, %v328_v26  ;;  %v322_v18 = vadd.f32 0.041655596, %v321_v28 }
  0xf2   :  { %694 = vmatpush.msrb.mxu3 %v960_v57  ;;  %667 = vmatpush.msrb.mxu2 %v502_v22  ;;  %v183_v43 = vand.u32 15, %v178_v55 }
  0xf3   :  { %v330_v23 = vmul.f32 %v329_v29, %v320_v16  ;;  %v323_v44 = vmul.f32 %v322_v18, %v320_v16 }
  0xf4   :  { %696 = vmatpush.msrb.mxu3 %v972_v0  ;;  %vm191_vm1 = vcmp.ge.s32.totalorder %v183_v43, 12 }
  0xf5   :  { %v331_v24 = vadd.f32 -0.16666654, %v330_v23  ;;  %v324_v45 = vadd.f32 -0.4999988, %v323_v44 }
  0xf6   :  { %698 = vmatpush.msrb.mxu3 %v992_v14 }
  0xf7   :  { %v332_v51 = vmul.f32 %v331_v24, %v320_v16  ;;  %v325_v10 = vmul.f32 %v324_v45, %v320_v16 }
  0xf8   :  { %700 = vmatpush.msrb.mxu3 %v995_v21 }
  0xf9   :  { %v333_v11 = vadd.f32 1.0, %v332_v51  ;;  %v326_v12 = vadd.f32 1.0, %v325_v10 }
  0xfa   :  { %702 = vmatpush.msrb.mxu3 %v998_v36 }
  0xfb   :  { %v334_v57 = vmul.f32 %v333_v11, %v318_v15  ;;  %v343_v46 = vxor.u32 2147483648, %v326_v12 }
  0xfc   :  { %704 = vmatpush.msrb.mxu3 %v1000_v39  ;;  %v368_v39 = vstv %s1141_s4 }
  0xfd   :  { %v340_v0 = vxor.u32 2147483648, %v334_v57  ;;  %v344_v49 = vsel %vm342_vm0, %v343_v46, %v334_v57 }
  0xff   :  { %v341_v47 = vsel %vm339_vm15, %v326_v12, %v340_v0 }
 0x100   :  { %v345_v14 = vsel %vm338_vm2, %v341_v47, %v344_v49 }
 0x101   :  { %v346_v52 = vsel %vm335_vm3, nan, %v345_v14 }
 0x102   :  { %v349_v21 = vsel %vm191_vm1, %v346_v52, %v773_v25 }
 0x103   :  { %v350_v54 = vmax.f32 %v349_v21, 0.0 }
 0x105   :  { %v401_v33 = vand.u32 4294901760, %v350_v54 }
 0x107   :  { %507 = vmatmul.f32.vlgmr.msra.gmra.mxu3 %v401_v33  ;;  %v402_v48 = vsub.f32 %v350_v54, %v401_v33 }
 0x109   :  { %561 = vmatmul.f32.vlgmr.msrb.gmra.mxu0 %v402_v48  ;;  %v403_v36 = vand.u32 4294901760, %v402_v48 }
 0x10b   :  { %600 = vmatmul.f32.vlgmr.msrb.gmra.mxu1 %v403_v36  ;;  %v404_v58 = vsub.f32 %v402_v48, %v403_v36 }
 0x10d   :  { %v405_v1 = vand.u32 4294901760, %v404_v58 }
 0x10f   :  { %406 = vmatmul.f32.vlgmr.msra.gmra.mxu2 %v405_v1  ;;  %706 = vmatmul.f32.vlgmr.msrb.gmra.mxu3 %v401_v33 }
 0x117   :  { %669 = vmatmul.f32.vlgmr.msrb.gmra.mxu2 %v401_v33 }
 0x186   :  { %v562_v42 = vpop.f32.mrf.mxu0 }
 0x188   :  { %v601_v61 = vpop.f32.mrf.mxu1 }
 0x18a   :  { %v508_v3 = vpop.f32.mrf.mxu3 }
 0x192   :  { %v407_v22 = vpop.f32.mrf.mxu2  ;;  %v707_v9 = vpop.f32.mrf.mxu3 }
 0x193   :  { %v408_v20 = vadd.f32 %v407_v22, %v368_v39 }
 0x195   :  { %v509_v25 = vadd.f32 %v508_v3, %v408_v20 }
 0x197   :  { %v563_v59 = vadd.f32 %v562_v42, %v509_v25 }
 0x199   :  { %v602_v62 = vadd.f32 %v601_v61, %v563_v59 }
 0x19a   :  { %v670_v63 = vpop.f32.mrf.mxu2 }
 0x19b   :  { %v671_v8 = vadd.f32 %v670_v63, %v602_v62 }
 0x19d   :  { %v708_v40 = vadd.f32 %v707_v9, %v671_v8 }
 0x19f   :  { %711 = vst.msk [vmem:[%s1142_s5] sm:$0xff] %vm710_vm4, %v708_v40 }

</bundles_post_ra>
